<compile_context>
chip_gen: v5e
topology: v5e:2x2
jax: 0.10.0
libtpu: 0.0.40
codegen_flags: <defaults>
</compile_context>

<pallas_src>
import jax
import jax.numpy as jnp
from jax import lax
from jax.experimental import pallas as pl
from jax.experimental.pallas import tpu as pltpu


def lstm_embed_kernel(xw_ref,    # (T, Bc, 4D) f32  hoisted input projection + bias
                      whh_ref,   # (D, 4D)      f32 or bf16, W_hh^T
                      pos_ref,   # (Bc, N*D)    int32, node positions lane-expanded
                      out_ref,   # (Bc, (N+1)*D) f32, lane-dense output row per graph
                      acc_ref):  # (Bc, N*D)    f32 VMEM scratch, gather accumulator
    T = xw_ref.shape[0]
    D = whh_ref.shape[0]
    nd = acc_ref.shape[1]
    N = nd // D

    # Hoisted loads: W_hh^T and the lane-expanded node positions are read from
    # VMEM exactly once and kept register/compiler resident across all steps.
    whh = whh_ref[...]
    pos_lanes = pos_ref[...]

    # Per-chunk gather accumulator (scratch persists across grid steps).
    acc_ref[...] = jnp.zeros_like(acc_ref)

    def step(t, carry):
        h, c = carry                                                # (Bc, D) f32
        # Only h @ W_hh^T remains on the serial critical path; bf16 operands
        # with f32 accumulation when mxu_dtype=bf16 (elementwise stays f32).
        gates = xw_ref[t] + jnp.dot(h.astype(whh.dtype), whh,
                                    preferred_element_type=jnp.float32)  # (Bc, 4D)
        s = jax.nn.sigmoid(gates)          # one full-width EUP pass
        u = jnp.tanh(gates)                # one full-width EUP pass
        i = s[:, 0 * D:1 * D]
        f = s[:, 1 * D:2 * D]
        g = u[:, 2 * D:3 * D]
        o = s[:, 3 * D:4 * D]
        c_new = f * c + i * g
        h_new = o * jnp.tanh(c_new)

        # On-the-fly node gather: lane-dense masked select (VPU work that
        # overlaps the MXU/EUP chain), no scalar loops, no hs history.
        h_rep = jnp.tile(h_new, (1, N))                             # (Bc, N*D)
        acc_ref[...] = jnp.where(pos_lanes == t, h_rep, acc_ref[...])
        return (h_new, c_new)

    h0 = jnp.zeros((out_ref.shape[0], D), jnp.float32)
    c0 = jnp.zeros((out_ref.shape[0], D), jnp.float32)
    # Full unroll only while T is small; partial unroll keeps LLO visibility
    # without instruction-memory blowup for long padded sequences.
    unroll = True if T <= 32 else 8
    h_last, _ = lax.fori_loop(0, T, step, (h0, c0), unroll=unroll)

    # Single lane-dense writeback: [node 0 | ... | node N-1 | final h].
    out_ref[...] = jnp.concatenate([acc_ref[...], h_last], axis=1)


def lstm_embed_forward(token_idx, node_pos, embed_table, w_ih, w_hh, b_ih, b_hh,
                       *, block_graphs=8, mxu_dtype=jnp.float32):
    """token_idx: int[B, T], node_pos: int[B, N]; returns float32[B*(N+1), D]."""
    B, T = token_idx.shape
    _, N = node_pos.shape
    V, D = embed_table.shape
    H4 = 4 * D
    hi = jax.lax.Precision.HIGHEST

    # Clamp indices on the host: Pallas does no VMEM bounds checks, and padded
    # graphs must index in-range rows (their outputs are dropped below).
    token_idx = jnp.clip(token_idx.astype(jnp.int32), 0, V - 1)
    node_pos = jnp.clip(node_pos.astype(jnp.int32), 0, T - 1)

    # Pad the batch to a multiple of the per-grid-step chunk size.
    Bc = int(block_graphs)
    B_pad = ((B + Bc - 1) // Bc) * Bc
    if B_pad != B:
        token_idx = jnp.concatenate(
            [token_idx, jnp.zeros((B_pad - B, T), jnp.int32)], axis=0)
        node_pos = jnp.concatenate(
            [node_pos, jnp.zeros((B_pad - B, N), jnp.int32)], axis=0)

    # Hoisted embedding gather + input projection + fused bias: one dense XLA
    # matmul over the whole batch, laid out time-major for the kernel.
    table_f32 = embed_table.astype(jnp.float32)
    bias = (b_ih + b_hh).astype(jnp.float32)
    emb = table_f32[token_idx]                                   # (B_pad, T, D)
    xw = jnp.einsum('btd,hd->tbh', emb, w_ih.astype(jnp.float32),
                    precision=hi) + bias                         # (T, B_pad, 4D)

    # Recurrence weight, transposed; optionally bf16 for the native MXU path
    # on v6e/v7x (f32 accumulation keeps precision; elementwise stays f32).
    whh_t = w_hh.T.astype(mxu_dtype)                             # (D, 4D)

    # Lane-expanded node positions: pos_lanes[b, n*D + d] = node_pos[b, n].
    pos_lanes = jnp.repeat(node_pos, D, axis=1)                  # (B_pad, N*D)

    grid = (B_pad // Bc,)
    grid_spec = pltpu.PrefetchScalarGridSpec(
        num_scalar_prefetch=0,
        grid=grid,
        in_specs=[
            pl.BlockSpec((T, Bc, H4), lambda i: (0, i, 0)),      # xw chunk
            pl.BlockSpec((D, H4), lambda i: (0, 0)),             # W_hh^T
            pl.BlockSpec((Bc, N * D), lambda i: (i, 0)),         # node positions
        ],
        out_specs=pl.BlockSpec((Bc, (N + 1) * D), lambda i: (i, 0)),
        scratch_shapes=[pltpu.VMEM((Bc, N * D), jnp.float32)],   # gather acc
    )

    out = pl.pallas_call(
        lstm_embed_kernel,
        out_shape=jax.ShapeDtypeStruct((B_pad, (N + 1) * D), jnp.float32),
        grid_spec=grid_spec,
        compiler_params=pltpu.CompilerParams(
            dimension_semantics=("parallel",)),   # chunks shard across TCs on v7x
    )(xw, whh_t, pos_lanes)

    # Drop padded graphs; torch.cat over nodes/graphs == a free reshape of the
    # lane-dense rows.
    return out[:B].reshape(B * (N + 1), D)


def lstm_embed_reference(token_idx, node_pos, embed_table, w_ih, w_hh, b_ih, b_hh):
    """Pure-JAX reference matching torch.nn.Embedding + torch.nn.LSTMCell."""
    D = embed_table.shape[1]
    hi = jax.lax.Precision.HIGHEST

    def one_graph(tok, pos):
        emb = embed_table[tok]                                   # (T, D)

        def cell(carry, x):
            h, c = carry
            gates = (jnp.dot(x, w_ih.T, precision=hi) + b_ih
                     + jnp.dot(h, w_hh.T, precision=hi) + b_hh)
            i, f, g, o = jnp.split(gates, 4)
            i, f, o = jax.nn.sigmoid(i), jax.nn.sigmoid(f), jax.nn.sigmoid(o)
            g = jnp.tanh(g)
            c = f * c + i * g
            h = o * jnp.tanh(c)
            return (h, c), h

        (h_last, _), hs = lax.scan(cell, (jnp.zeros(D), jnp.zeros(D)), emb)
        return jnp.concatenate([hs[pos], h_last[None, :]], axis=0)

    per_graph = jax.vmap(one_graph)(token_idx, node_pos)         # (B, N+1, D)
    return per_graph.reshape(-1, D)


if __name__ == "__main__":
    latent_dim = 32        # D
    num_node_feats = 20    # vocab size V
    seq_len = 8            # T (len(g.token_idx), padded to a common length)
    num_sel_nodes = 3      # raw_variable_nodes + const_nodes (padded to common N)
    batch = 16             # graphs; with block_graphs=8 the grid has 2 steps

    key = jax.random.PRNGKey(0)
    k1, k2, k3, k4, k5, k6, k7 = jax.random.split(key, 7)

    # Deterministic synthetic parameters (shapes from the module __init__).
    embed_table = jax.random.normal(k1, (num_node_feats, latent_dim), jnp.float32)
    w_ih = 0.2 * jax.random.normal(k2, (4 * latent_dim, latent_dim), jnp.float32)
    w_hh = 0.2 * jax.random.normal(k3, (4 * latent_dim, latent_dim), jnp.float32)
    b_ih = 0.1 * jax.random.normal(k4, (4 * latent_dim,), jnp.float32)
    b_hh = 0.1 * jax.random.normal(k5, (4 * latent_dim,), jnp.float32)

    # Synthetic graph batch: token sequences + positions of var/const nodes.
    # TODO(synk): variable-length graph_list / dict lookups (var_pos, const_pos)
    # remain host-side bookkeeping; graphs are padded to a common T and N here.
    token_idx = jax.random.randint(
        k6, (batch, seq_len), 0, num_node_feats, jnp.int32)
    node_pos = jax.random.randint(
        k7, (batch, num_sel_nodes), 0, seq_len, jnp.int32)

    ref = lstm_embed_reference(token_idx, node_pos, embed_table,
                               w_ih, w_hh, b_ih, b_hh)
    ref = jax.block_until_ready(ref)

    # Full-f32 path (portable baseline, all generations).
    out = lstm_embed_forward(token_idx, node_pos, embed_table,
                             w_ih, w_hh, b_ih, b_hh,
                             block_graphs=8, mxu_dtype=jnp.float32)
    out = jax.block_until_ready(out)
    assert out.shape == (batch * (num_sel_nodes + 1), latent_dim)
    assert jnp.allclose(out, ref, atol=1e-4, rtol=1e-4), (
        f"f32 max abs err {jnp.max(jnp.abs(out - ref))}")

    # bf16-MXU path (native MXU on v6e/v7x; f32 accumulate + f32 gate math).
    out_bf16 = lstm_embed_forward(token_idx, node_pos, embed_table,
                                  w_ih, w_hh, b_ih, b_hh,
                                  block_graphs=8, mxu_dtype=jnp.bfloat16)
    out_bf16 = jax.block_until_ready(out_bf16)
    assert out_bf16.shape == (batch * (num_sel_nodes + 1), latent_dim)
    assert jnp.allclose(out_bf16, ref, atol=1e-1), (
        f"bf16 max abs err {jnp.max(jnp.abs(out_bf16 - ref))}")

    print("KERNEL_OK")
</pallas_src>

<mosaic_0001>
module attributes {stable_mosaic.version = 11 : i64} {
  func.func @lstm_embed_kernel(%arg0: i32, %arg1: memref<8x8x128xf32, #tpu.memory_space<vmem>>, %arg2: memref<32x128xf32, #tpu.memory_space<vmem>>, %arg3: memref<8x96xi32, #tpu.memory_space<vmem>>, %arg4: memref<8x128xf32, #tpu.memory_space<vmem>>, %arg5: memref<8x96xf32, #tpu.memory_space<vmem>>) attributes {dimension_semantics = [#tpu.dimension_semantics<parallel>], iteration_bounds = array<i64: 2>, scalar_prefetch = 0 : i64, scratch_operands = 1 : i64, tpu.core_type = #tpu.core_type<tc>, window_params = [{transform_indices = @transform_0, window_bounds = array<i64: 8, 8, 128>}, {pipeline_mode = #tpu.pipeline_mode<synchronous>, transform_indices = @transform_1, window_bounds = array<i64: 32, 128>}, {transform_indices = @transform_2, window_bounds = array<i64: 8, 96>}, {transform_indices = @transform_3, window_bounds = array<i64: 8, 128>}]} {
    %c0 = arith.constant 0 : index
    %c0_0 = arith.constant 0 : index
    %0 = vector.load %arg2[%c0, %c0_0] : memref<32x128xf32, #tpu.memory_space<vmem>>, vector<32x128xf32>
    %c0_1 = arith.constant 0 : index
    %c0_2 = arith.constant 0 : index
    %1 = vector.load %arg3[%c0_1, %c0_2] : memref<8x96xi32, #tpu.memory_space<vmem>>, vector<8x96xi32>
    %cst = arith.constant 0.000000e+00 : f32
    %2 = vector.broadcast %cst : f32 to vector<8x96xf32>
    %c0_3 = arith.constant 0 : index
    %c0_4 = arith.constant 0 : index
    %3 = vector.load %arg5[%c0_3, %c0_4] : memref<8x96xf32, #tpu.memory_space<vmem>>, vector<8x96xf32>
    tpu.vector_store %arg5[%c0_3, %c0_4], %2 {strides = array<i32>} : memref<8x96xf32, #tpu.memory_space<vmem>>, vector<8x96xf32>,
    %cst_5 = arith.constant 0.000000e+00 : f32
    %4 = vector.broadcast %cst_5 : f32 to vector<8x32xf32>
    %cst_6 = arith.constant 0.000000e+00 : f32
    %5 = vector.broadcast %cst_6 : f32 to vector<8x32xf32>
    %c0_i32 = arith.constant 0 : i32
    %6 = arith.index_cast %c0_i32 : i32 to index
    %c0_7 = arith.constant 0 : index
    %c0_8 = arith.constant 0 : index
    %7 = vector.load %arg1[%6, %c0_7, %c0_8] : memref<8x8x128xf32, #tpu.memory_space<vmem>>, vector<1x8x128xf32>
    %8 = vector.shape_cast %7 : vector<1x8x128xf32> to vector<8x128xf32>
    %cst_9 = arith.constant dense<0.000000e+00> : vector<8x128xf32>
    %9 = tpu.matmul %4, %0, %cst_9 {dimension_numbers = #tpu.dot_dimension_numbers<[1], [0], [0], [1], [0, 0, 1, 1], [], []>} : vector<8x32xf32>, vector<32x128xf32>, vector<8x128xf32> -> vector<8x128xf32>
    %10 = arith.addf %8, %9 : vector<8x128xf32>
    %11 = arith.negf %10 : vector<8x128xf32>
    %12 = math.exp %11 : vector<8x128xf32>
    %cst_10 = arith.constant 1.000000e+00 : f32
    %13 = vector.broadcast %cst_10 : f32 to vector<8x128xf32>
    %14 = arith.addf %13, %12 : vector<8x128xf32>
    %15 = arith.divf %13, %14 : vector<8x128xf32>
    %16 = math.tanh %10 : vector<8x128xf32>
    %17 = vector.extract_strided_slice %15 {offsets = [0, 0], sizes = [8, 32], strides = [1, 1]} : vector<8x128xf32> to vector<8x32xf32>
    %18 = vector.extract_strided_slice %15 {offsets = [0, 32], sizes = [8, 32], strides = [1, 1]} : vector<8x128xf32> to vector<8x32xf32>
    %19 = vector.extract_strided_slice %16 {offsets = [0, 64], sizes = [8, 32], strides = [1, 1]} : vector<8x128xf32> to vector<8x32xf32>
    %20 = vector.extract_strided_slice %15 {offsets = [0, 96], sizes = [8, 32], strides = [1, 1]} : vector<8x128xf32> to vector<8x32xf32>
    %21 = arith.mulf %18, %5 : vector<8x32xf32>
    %22 = arith.mulf %17, %19 : vector<8x32xf32>
    %23 = arith.addf %21, %22 : vector<8x32xf32>
    %24 = math.tanh %23 : vector<8x32xf32>
    %25 = arith.mulf %20, %24 : vector<8x32xf32>
    %26 = tpu.concatenate %25, %25, %25 in 1 : vector<8x32xf32>, vector<8x32xf32>, vector<8x32xf32> -> vector<8x96xf32>
    %27 = vector.broadcast %c0_i32 : i32 to vector<8x96xi32>
    %28 = arith.cmpi eq, %1, %27 : vector<8x96xi32>
    %c0_11 = arith.constant 0 : index
    %c0_12 = arith.constant 0 : index
    %29 = vector.load %arg5[%c0_11, %c0_12] : memref<8x96xf32, #tpu.memory_space<vmem>>, vector<8x96xf32>
    %30 = arith.select %28, %26, %29 : vector<8x96xi1>, vector<8x96xf32>
    %c0_13 = arith.constant 0 : index
    %c0_14 = arith.constant 0 : index
    %31 = vector.load %arg5[%c0_13, %c0_14] : memref<8x96xf32, #tpu.memory_space<vmem>>, vector<8x96xf32>
    tpu.vector_store %arg5[%c0_13, %c0_14], %30 {strides = array<i32>} : memref<8x96xf32, #tpu.memory_space<vmem>>, vector<8x96xf32>,
    %c1_i32 = arith.constant 1 : i32
    %32 = arith.index_cast %c1_i32 : i32 to index
    %c0_15 = arith.constant 0 : index
    %c0_16 = arith.constant 0 : index
    %33 = vector.load %arg1[%32, %c0_15, %c0_16] : memref<8x8x128xf32, #tpu.memory_space<vmem>>, vector<1x8x128xf32>
    %34 = vector.shape_cast %33 : vector<1x8x128xf32> to vector<8x128xf32>
    %cst_17 = arith.constant dense<0.000000e+00> : vector<8x128xf32>
    %35 = tpu.matmul %25, %0, %cst_17 {dimension_numbers = #tpu.dot_dimension_numbers<[1], [0], [0], [1], [0, 0, 1, 1], [], []>} : vector<8x32xf32>, vector<32x128xf32>, vector<8x128xf32> -> vector<8x128xf32>
    %36 = arith.addf %34, %35 : vector<8x128xf32>
    %37 = arith.negf %36 : vector<8x128xf32>
    %38 = math.exp %37 : vector<8x128xf32>
    %cst_18 = arith.constant 1.000000e+00 : f32
    %39 = vector.broadcast %cst_18 : f32 to vector<8x128xf32>
    %40 = arith.addf %39, %38 : vector<8x128xf32>
    %41 = arith.divf %39, %40 : vector<8x128xf32>
    %42 = math.tanh %36 : vector<8x128xf32>
    %43 = vector.extract_strided_slice %41 {offsets = [0, 0], sizes = [8, 32], strides = [1, 1]} : vector<8x128xf32> to vector<8x32xf32>
    %44 = vector.extract_strided_slice %41 {offsets = [0, 32], sizes = [8, 32], strides = [1, 1]} : vector<8x128xf32> to vector<8x32xf32>
    %45 = vector.extract_strided_slice %42 {offsets = [0, 64], sizes = [8, 32], strides = [1, 1]} : vector<8x128xf32> to vector<8x32xf32>
    %46 = vector.extract_strided_slice %41 {offsets = [0, 96], sizes = [8, 32], strides = [1, 1]} : vector<8x128xf32> to vector<8x32xf32>
    %47 = arith.mulf %44, %23 : vector<8x32xf32>
    %48 = arith.mulf %43, %45 : vector<8x32xf32>
    %49 = arith.addf %47, %48 : vector<8x32xf32>
    %50 = math.tanh %49 : vector<8x32xf32>
    %51 = arith.mulf %46, %50 : vector<8x32xf32>
    %52 = tpu.concatenate %51, %51, %51 in 1 : vector<8x32xf32>, vector<8x32xf32>, vector<8x32xf32> -> vector<8x96xf32>
    %53 = vector.broadcast %c1_i32 : i32 to vector<8x96xi32>
    %54 = arith.cmpi eq, %1, %53 : vector<8x96xi32>
    %c0_19 = arith.constant 0 : index
    %c0_20 = arith.constant 0 : index
    %55 = vector.load %arg5[%c0_19, %c0_20] : memref<8x96xf32, #tpu.memory_space<vmem>>, vector<8x96xf32>
    %56 = arith.select %54, %52, %55 : vector<8x96xi1>, vector<8x96xf32>
    %c0_21 = arith.constant 0 : index
    %c0_22 = arith.constant 0 : index
    %57 = vector.load %arg5[%c0_21, %c0_22] : memref<8x96xf32, #tpu.memory_space<vmem>>, vector<8x96xf32>
    tpu.vector_store %arg5[%c0_21, %c0_22], %56 {strides = array<i32>} : memref<8x96xf32, #tpu.memory_space<vmem>>, vector<8x96xf32>,
    %c2_i32 = arith.constant 2 : i32
    %58 = arith.index_cast %c2_i32 : i32 to index
    %c0_23 = arith.constant 0 : index
    %c0_24 = arith.constant 0 : index
    %59 = vector.load %arg1[%58, %c0_23, %c0_24] : memref<8x8x128xf32, #tpu.memory_space<vmem>>, vector<1x8x128xf32>
    %60 = vector.shape_cast %59 : vector<1x8x128xf32> to vector<8x128xf32>
    %cst_25 = arith.constant dense<0.000000e+00> : vector<8x128xf32>
    %61 = tpu.matmul %51, %0, %cst_25 {dimension_numbers = #tpu.dot_dimension_numbers<[1], [0], [0], [1], [0, 0, 1, 1], [], []>} : vector<8x32xf32>, vector<32x128xf32>, vector<8x128xf32> -> vector<8x128xf32>
    %62 = arith.addf %60, %61 : vector<8x128xf32>
    %63 = arith.negf %62 : vector<8x128xf32>
    %64 = math.exp %63 : vector<8x128xf32>
    %cst_26 = arith.constant 1.000000e+00 : f32
    %65 = vector.broadcast %cst_26 : f32 to vector<8x128xf32>
    %66 = arith.addf %65, %64 : vector<8x128xf32>
    %67 = arith.divf %65, %66 : vector<8x128xf32>
    %68 = math.tanh %62 : vector<8x128xf32>
    %69 = vector.extract_strided_slice %67 {offsets = [0, 0], sizes = [8, 32], strides = [1, 1]} : vector<8x128xf32> to vector<8x32xf32>
    %70 = vector.extract_strided_slice %67 {offsets = [0, 32], sizes = [8, 32], strides = [1, 1]} : vector<8x128xf32> to vector<8x32xf32>
    %71 = vector.extract_strided_slice %68 {offsets = [0, 64], sizes = [8, 32], strides = [1, 1]} : vector<8x128xf32> to vector<8x32xf32>
    %72 = vector.extract_strided_slice %67 {offsets = [0, 96], sizes = [8, 32], strides = [1, 1]} : vector<8x128xf32> to vector<8x32xf32>
    %73 = arith.mulf %70, %49 : vector<8x32xf32>
    %74 = arith.mulf %69, %71 : vector<8x32xf32>
    %75 = arith.addf %73, %74 : vector<8x32xf32>
    %76 = math.tanh %75 : vector<8x32xf32>
    %77 = arith.mulf %72, %76 : vector<8x32xf32>
    %78 = tpu.concatenate %77, %77, %77 in 1 : vector<8x32xf32>, vector<8x32xf32>, vector<8x32xf32> -> vector<8x96xf32>
    %79 = vector.broadcast %c2_i32 : i32 to vector<8x96xi32>
    %80 = arith.cmpi eq, %1, %79 : vector<8x96xi32>
    %c0_27 = arith.constant 0 : index
    %c0_28 = arith.constant 0 : index
    %81 = vector.load %arg5[%c0_27, %c0_28] : memref<8x96xf32, #tpu.memory_space<vmem>>, vector<8x96xf32>
    %82 = arith.select %80, %78, %81 : vector<8x96xi1>, vector<8x96xf32>
    %c0_29 = arith.constant 0 : index
    %c0_30 = arith.constant 0 : index
    %83 = vector.load %arg5[%c0_29, %c0_30] : memref<8x96xf32, #tpu.memory_space<vmem>>, vector<8x96xf32>
    tpu.vector_store %arg5[%c0_29, %c0_30], %82 {strides = array<i32>} : memref<8x96xf32, #tpu.memory_space<vmem>>, vector<8x96xf32>,
    %c3_i32 = arith.constant 3 : i32
    %84 = arith.index_cast %c3_i32 : i32 to index
    %c0_31 = arith.constant 0 : index
    %c0_32 = arith.constant 0 : index
    %85 = vector.load %arg1[%84, %c0_31, %c0_32] : memref<8x8x128xf32, #tpu.memory_space<vmem>>, vector<1x8x128xf32>
    %86 = vector.shape_cast %85 : vector<1x8x128xf32> to vector<8x128xf32>
    %cst_33 = arith.constant dense<0.000000e+00> : vector<8x128xf32>
    %87 = tpu.matmul %77, %0, %cst_33 {dimension_numbers = #tpu.dot_dimension_numbers<[1], [0], [0], [1], [0, 0, 1, 1], [], []>} : vector<8x32xf32>, vector<32x128xf32>, vector<8x128xf32> -> vector<8x128xf32>
    %88 = arith.addf %86, %87 : vector<8x128xf32>
    %89 = arith.negf %88 : vector<8x128xf32>
    %90 = math.exp %89 : vector<8x128xf32>
    %cst_34 = arith.constant 1.000000e+00 : f32
    %91 = vector.broadcast %cst_34 : f32 to vector<8x128xf32>
    %92 = arith.addf %91, %90 : vector<8x128xf32>
    %93 = arith.divf %91, %92 : vector<8x128xf32>
    %94 = math.tanh %88 : vector<8x128xf32>
    %95 = vector.extract_strided_slice %93 {offsets = [0, 0], sizes = [8, 32], strides = [1, 1]} : vector<8x128xf32> to vector<8x32xf32>
    %96 = vector.extract_strided_slice %93 {offsets = [0, 32], sizes = [8, 32], strides = [1, 1]} : vector<8x128xf32> to vector<8x32xf32>
    %97 = vector.extract_strided_slice %94 {offsets = [0, 64], sizes = [8, 32], strides = [1, 1]} : vector<8x128xf32> to vector<8x32xf32>
    %98 = vector.extract_strided_slice %93 {offsets = [0, 96], sizes = [8, 32], strides = [1, 1]} : vector<8x128xf32> to vector<8x32xf32>
    %99 = arith.mulf %96, %75 : vector<8x32xf32>
    %100 = arith.mulf %95, %97 : vector<8x32xf32>
    %101 = arith.addf %99, %100 : vector<8x32xf32>
    %102 = math.tanh %101 : vector<8x32xf32>
    %103 = arith.mulf %98, %102 : vector<8x32xf32>
    %104 = tpu.concatenate %103, %103, %103 in 1 : vector<8x32xf32>, vector<8x32xf32>, vector<8x32xf32> -> vector<8x96xf32>
    %105 = vector.broadcast %c3_i32 : i32 to vector<8x96xi32>
    %106 = arith.cmpi eq, %1, %105 : vector<8x96xi32>
    %c0_35 = arith.constant 0 : index
    %c0_36 = arith.constant 0 : index
    %107 = vector.load %arg5[%c0_35, %c0_36] : memref<8x96xf32, #tpu.memory_space<vmem>>, vector<8x96xf32>
    %108 = arith.select %106, %104, %107 : vector<8x96xi1>, vector<8x96xf32>
    %c0_37 = arith.constant 0 : index
    %c0_38 = arith.constant 0 : index
    %109 = vector.load %arg5[%c0_37, %c0_38] : memref<8x96xf32, #tpu.memory_space<vmem>>, vector<8x96xf32>
    tpu.vector_store %arg5[%c0_37, %c0_38], %108 {strides = array<i32>} : memref<8x96xf32, #tpu.memory_space<vmem>>, vector<8x96xf32>,
    %c4_i32 = arith.constant 4 : i32
    %110 = arith.index_cast %c4_i32 : i32 to index
    %c0_39 = arith.constant 0 : index
    %c0_40 = arith.constant 0 : index
    %111 = vector.load %arg1[%110, %c0_39, %c0_40] : memref<8x8x128xf32, #tpu.memory_space<vmem>>, vector<1x8x128xf32>
    %112 = vector.shape_cast %111 : vector<1x8x128xf32> to vector<8x128xf32>
    %cst_41 = arith.constant dense<0.000000e+00> : vector<8x128xf32>
    %113 = tpu.matmul %103, %0, %cst_41 {dimension_numbers = #tpu.dot_dimension_numbers<[1], [0], [0], [1], [0, 0, 1, 1], [], []>} : vector<8x32xf32>, vector<32x128xf32>, vector<8x128xf32> -> vector<8x128xf32>
    %114 = arith.addf %112, %113 : vector<8x128xf32>
    %115 = arith.negf %114 : vector<8x128xf32>
    %116 = math.exp %115 : vector<8x128xf32>
    %cst_42 = arith.constant 1.000000e+00 : f32
    %117 = vector.broadcast %cst_42 : f32 to vector<8x128xf32>
    %118 = arith.addf %117, %116 : vector<8x128xf32>
    %119 = arith.divf %117, %118 : vector<8x128xf32>
    %120 = math.tanh %114 : vector<8x128xf32>
    %121 = vector.extract_strided_slice %119 {offsets = [0, 0], sizes = [8, 32], strides = [1, 1]} : vector<8x128xf32> to vector<8x32xf32>
    %122 = vector.extract_strided_slice %119 {offsets = [0, 32], sizes = [8, 32], strides = [1, 1]} : vector<8x128xf32> to vector<8x32xf32>
    %123 = vector.extract_strided_slice %120 {offsets = [0, 64], sizes = [8, 32], strides = [1, 1]} : vector<8x128xf32> to vector<8x32xf32>
    %124 = vector.extract_strided_slice %119 {offsets = [0, 96], sizes = [8, 32], strides = [1, 1]} : vector<8x128xf32> to vector<8x32xf32>
    %125 = arith.mulf %122, %101 : vector<8x32xf32>
    %126 = arith.mulf %121, %123 : vector<8x32xf32>
    %127 = arith.addf %125, %126 : vector<8x32xf32>
    %128 = math.tanh %127 : vector<8x32xf32>
    %129 = arith.mulf %124, %128 : vector<8x32xf32>
    %130 = tpu.concatenate %129, %129, %129 in 1 : vector<8x32xf32>, vector<8x32xf32>, vector<8x32xf32> -> vector<8x96xf32>
    %131 = vector.broadcast %c4_i32 : i32 to vector<8x96xi32>
    %132 = arith.cmpi eq, %1, %131 : vector<8x96xi32>
    %c0_43 = arith.constant 0 : index
    %c0_44 = arith.constant 0 : index
    %133 = vector.load %arg5[%c0_43, %c0_44] : memref<8x96xf32, #tpu.memory_space<vmem>>, vector<8x96xf32>
    %134 = arith.select %132, %130, %133 : vector<8x96xi1>, vector<8x96xf32>
    %c0_45 = arith.constant 0 : index
    %c0_46 = arith.constant 0 : index
    %135 = vector.load %arg5[%c0_45, %c0_46] : memref<8x96xf32, #tpu.memory_space<vmem>>, vector<8x96xf32>
    tpu.vector_store %arg5[%c0_45, %c0_46], %134 {strides = array<i32>} : memref<8x96xf32, #tpu.memory_space<vmem>>, vector<8x96xf32>,
    %c5_i32 = arith.constant 5 : i32
    %136 = arith.index_cast %c5_i32 : i32 to index
    %c0_47 = arith.constant 0 : index
    %c0_48 = arith.constant 0 : index
    %137 = vector.load %arg1[%136, %c0_47, %c0_48] : memref<8x8x128xf32, #tpu.memory_space<vmem>>, vector<1x8x128xf32>
    %138 = vector.shape_cast %137 : vector<1x8x128xf32> to vector<8x128xf32>
    %cst_49 = arith.constant dense<0.000000e+00> : vector<8x128xf32>
    %139 = tpu.matmul %129, %0, %cst_49 {dimension_numbers = #tpu.dot_dimension_numbers<[1], [0], [0], [1], [0, 0, 1, 1], [], []>} : vector<8x32xf32>, vector<32x128xf32>, vector<8x128xf32> -> vector<8x128xf32>
    %140 = arith.addf %138, %139 : vector<8x128xf32>
    %141 = arith.negf %140 : vector<8x128xf32>
    %142 = math.exp %141 : vector<8x128xf32>
    %cst_50 = arith.constant 1.000000e+00 : f32
    %143 = vector.broadcast %cst_50 : f32 to vector<8x128xf32>
    %144 = arith.addf %143, %142 : vector<8x128xf32>
    %145 = arith.divf %143, %144 : vector<8x128xf32>
    %146 = math.tanh %140 : vector<8x128xf32>
    %147 = vector.extract_strided_slice %145 {offsets = [0, 0], sizes = [8, 32], strides = [1, 1]} : vector<8x128xf32> to vector<8x32xf32>
    %148 = vector.extract_strided_slice %145 {offsets = [0, 32], sizes = [8, 32], strides = [1, 1]} : vector<8x128xf32> to vector<8x32xf32>
    %149 = vector.extract_strided_slice %146 {offsets = [0, 64], sizes = [8, 32], strides = [1, 1]} : vector<8x128xf32> to vector<8x32xf32>
    %150 = vector.extract_strided_slice %145 {offsets = [0, 96], sizes = [8, 32], strides = [1, 1]} : vector<8x128xf32> to vector<8x32xf32>
    %151 = arith.mulf %148, %127 : vector<8x32xf32>
    %152 = arith.mulf %147, %149 : vector<8x32xf32>
    %153 = arith.addf %151, %152 : vector<8x32xf32>
    %154 = math.tanh %153 : vector<8x32xf32>
    %155 = arith.mulf %150, %154 : vector<8x32xf32>
    %156 = tpu.concatenate %155, %155, %155 in 1 : vector<8x32xf32>, vector<8x32xf32>, vector<8x32xf32> -> vector<8x96xf32>
    %157 = vector.broadcast %c5_i32 : i32 to vector<8x96xi32>
    %158 = arith.cmpi eq, %1, %157 : vector<8x96xi32>
    %c0_51 = arith.constant 0 : index
    %c0_52 = arith.constant 0 : index
    %159 = vector.load %arg5[%c0_51, %c0_52] : memref<8x96xf32, #tpu.memory_space<vmem>>, vector<8x96xf32>
    %160 = arith.select %158, %156, %159 : vector<8x96xi1>, vector<8x96xf32>
    %c0_53 = arith.constant 0 : index
    %c0_54 = arith.constant 0 : index
    %161 = vector.load %arg5[%c0_53, %c0_54] : memref<8x96xf32, #tpu.memory_space<vmem>>, vector<8x96xf32>
    tpu.vector_store %arg5[%c0_53, %c0_54], %160 {strides = array<i32>} : memref<8x96xf32, #tpu.memory_space<vmem>>, vector<8x96xf32>,
    %c6_i32 = arith.constant 6 : i32
    %162 = arith.index_cast %c6_i32 : i32 to index
    %c0_55 = arith.constant 0 : index
    %c0_56 = arith.constant 0 : index
    %163 = vector.load %arg1[%162, %c0_55, %c0_56] : memref<8x8x128xf32, #tpu.memory_space<vmem>>, vector<1x8x128xf32>
    %164 = vector.shape_cast %163 : vector<1x8x128xf32> to vector<8x128xf32>
    %cst_57 = arith.constant dense<0.000000e+00> : vector<8x128xf32>
    %165 = tpu.matmul %155, %0, %cst_57 {dimension_numbers = #tpu.dot_dimension_numbers<[1], [0], [0], [1], [0, 0, 1, 1], [], []>} : vector<8x32xf32>, vector<32x128xf32>, vector<8x128xf32> -> vector<8x128xf32>
    %166 = arith.addf %164, %165 : vector<8x128xf32>
    %167 = arith.negf %166 : vector<8x128xf32>
    %168 = math.exp %167 : vector<8x128xf32>
    %cst_58 = arith.constant 1.000000e+00 : f32
    %169 = vector.broadcast %cst_58 : f32 to vector<8x128xf32>
    %170 = arith.addf %169, %168 : vector<8x128xf32>
    %171 = arith.divf %169, %170 : vector<8x128xf32>
    %172 = math.tanh %166 : vector<8x128xf32>
    %173 = vector.extract_strided_slice %171 {offsets = [0, 0], sizes = [8, 32], strides = [1, 1]} : vector<8x128xf32> to vector<8x32xf32>
    %174 = vector.extract_strided_slice %171 {offsets = [0, 32], sizes = [8, 32], strides = [1, 1]} : vector<8x128xf32> to vector<8x32xf32>
    %175 = vector.extract_strided_slice %172 {offsets = [0, 64], sizes = [8, 32], strides = [1, 1]} : vector<8x128xf32> to vector<8x32xf32>
    %176 = vector.extract_strided_slice %171 {offsets = [0, 96], sizes = [8, 32], strides = [1, 1]} : vector<8x128xf32> to vector<8x32xf32>
    %177 = arith.mulf %174, %153 : vector<8x32xf32>
    %178 = arith.mulf %173, %175 : vector<8x32xf32>
    %179 = arith.addf %177, %178 : vector<8x32xf32>
    %180 = math.tanh %179 : vector<8x32xf32>
    %181 = arith.mulf %176, %180 : vector<8x32xf32>
    %182 = tpu.concatenate %181, %181, %181 in 1 : vector<8x32xf32>, vector<8x32xf32>, vector<8x32xf32> -> vector<8x96xf32>
    %183 = vector.broadcast %c6_i32 : i32 to vector<8x96xi32>
    %184 = arith.cmpi eq, %1, %183 : vector<8x96xi32>
    %c0_59 = arith.constant 0 : index
    %c0_60 = arith.constant 0 : index
    %185 = vector.load %arg5[%c0_59, %c0_60] : memref<8x96xf32, #tpu.memory_space<vmem>>, vector<8x96xf32>
    %186 = arith.select %184, %182, %185 : vector<8x96xi1>, vector<8x96xf32>
    %c0_61 = arith.constant 0 : index
    %c0_62 = arith.constant 0 : index
    %187 = vector.load %arg5[%c0_61, %c0_62] : memref<8x96xf32, #tpu.memory_space<vmem>>, vector<8x96xf32>
    tpu.vector_store %arg5[%c0_61, %c0_62], %186 {strides = array<i32>} : memref<8x96xf32, #tpu.memory_space<vmem>>, vector<8x96xf32>,
    %c7_i32 = arith.constant 7 : i32
    %188 = arith.index_cast %c7_i32 : i32 to index
    %c0_63 = arith.constant 0 : index
    %c0_64 = arith.constant 0 : index
    %189 = vector.load %arg1[%188, %c0_63, %c0_64] : memref<8x8x128xf32, #tpu.memory_space<vmem>>, vector<1x8x128xf32>
    %190 = vector.shape_cast %189 : vector<1x8x128xf32> to vector<8x128xf32>
    %cst_65 = arith.constant dense<0.000000e+00> : vector<8x128xf32>
    %191 = tpu.matmul %181, %0, %cst_65 {dimension_numbers = #tpu.dot_dimension_numbers<[1], [0], [0], [1], [0, 0, 1, 1], [], []>} : vector<8x32xf32>, vector<32x128xf32>, vector<8x128xf32> -> vector<8x128xf32>
    %192 = arith.addf %190, %191 : vector<8x128xf32>
    %193 = arith.negf %192 : vector<8x128xf32>
    %194 = math.exp %193 : vector<8x128xf32>
    %cst_66 = arith.constant 1.000000e+00 : f32
    %195 = vector.broadcast %cst_66 : f32 to vector<8x128xf32>
    %196 = arith.addf %195, %194 : vector<8x128xf32>
    %197 = arith.divf %195, %196 : vector<8x128xf32>
    %198 = math.tanh %192 : vector<8x128xf32>
    %199 = vector.extract_strided_slice %197 {offsets = [0, 0], sizes = [8, 32], strides = [1, 1]} : vector<8x128xf32> to vector<8x32xf32>
    %200 = vector.extract_strided_slice %197 {offsets = [0, 32], sizes = [8, 32], strides = [1, 1]} : vector<8x128xf32> to vector<8x32xf32>
    %201 = vector.extract_strided_slice %198 {offsets = [0, 64], sizes = [8, 32], strides = [1, 1]} : vector<8x128xf32> to vector<8x32xf32>
    %202 = vector.extract_strided_slice %197 {offsets = [0, 96], sizes = [8, 32], strides = [1, 1]} : vector<8x128xf32> to vector<8x32xf32>
    %203 = arith.mulf %200, %179 : vector<8x32xf32>
    %204 = arith.mulf %199, %201 : vector<8x32xf32>
    %205 = arith.addf %203, %204 : vector<8x32xf32>
    %206 = math.tanh %205 : vector<8x32xf32>
    %207 = arith.mulf %202, %206 : vector<8x32xf32>
    %208 = tpu.concatenate %207, %207, %207 in 1 : vector<8x32xf32>, vector<8x32xf32>, vector<8x32xf32> -> vector<8x96xf32>
    %209 = vector.broadcast %c7_i32 : i32 to vector<8x96xi32>
    %210 = arith.cmpi eq, %1, %209 : vector<8x96xi32>
    %c0_67 = arith.constant 0 : index
    %c0_68 = arith.constant 0 : index
    %211 = vector.load %arg5[%c0_67, %c0_68] : memref<8x96xf32, #tpu.memory_space<vmem>>, vector<8x96xf32>
    %212 = arith.select %210, %208, %211 : vector<8x96xi1>, vector<8x96xf32>
    %c0_69 = arith.constant 0 : index
    %c0_70 = arith.constant 0 : index
    %213 = vector.load %arg5[%c0_69, %c0_70] : memref<8x96xf32, #tpu.memory_space<vmem>>, vector<8x96xf32>
    tpu.vector_store %arg5[%c0_69, %c0_70], %212 {strides = array<i32>} : memref<8x96xf32, #tpu.memory_space<vmem>>, vector<8x96xf32>,
    %c8_i32 = arith.constant 8 : i32
    %c0_71 = arith.constant 0 : index
    %c0_72 = arith.constant 0 : index
    %214 = vector.load %arg5[%c0_71, %c0_72] : memref<8x96xf32, #tpu.memory_space<vmem>>, vector<8x96xf32>
    %215 = tpu.concatenate %214, %207 in 1 : vector<8x96xf32>, vector<8x32xf32> -> vector<8x128xf32>
    %c0_73 = arith.constant 0 : index
    %c0_74 = arith.constant 0 : index
    %216 = vector.load %arg4[%c0_73, %c0_74] : memref<8x128xf32, #tpu.memory_space<vmem>>, vector<8x128xf32>
    tpu.vector_store %arg4[%c0_73, %c0_74], %215 {strides = array<i32>} : memref<8x128xf32, #tpu.memory_space<vmem>>, vector<8x128xf32>,
    return
  }
  func.func @transform_0(%arg0: i32) -> (i32, i32, i32) {
    %c0_i32 = arith.constant 0 : i32
    %c0_i32_0 = arith.constant 0 : i32
    %c0_i32_1 = arith.constant 0 : i32
    return %c0_i32, %arg0, %c0_i32_0 : i32, i32, i32
  }
  func.func @transform_1(%arg0: i32) -> (i32, i32) {
    %c0_i32 = arith.constant 0 : i32
    %c0_i32_0 = arith.constant 0 : i32
    %c0_i32_1 = arith.constant 0 : i32
    return %c0_i32, %c0_i32_0 : i32, i32
  }
  func.func @transform_2(%arg0: i32) -> (i32, i32) {
    %c0_i32 = arith.constant 0 : i32
    %c0_i32_0 = arith.constant 0 : i32
    return %arg0, %c0_i32 : i32, i32
  }
  func.func @transform_3(%arg0: i32) -> (i32, i32) {
    %c0_i32 = arith.constant 0 : i32
    %c0_i32_0 = arith.constant 0 : i32
    return %arg0, %c0_i32 : i32, i32
  }
}

</mosaic_0001>

<bundles_post_ra>
// kernel: tpu_custom_call.1
= control target key start
LH: loop header
LB: loop body
LE: loop exit
PB: predicated region body
PF: predicated region fallthrough
CT: control target
= control target key end

     0   :  { %s1715_s0 = inlined_call_operand.hbm [shape: f32[8,16,128], index: 0, kind: input, shape index: {}]   ;;  %s1716_s1 = inlined_call_operand.hbm [shape: f32[32,128], index: 1, kind: input, shape index: {}]   ;;  %s1717_s2 = inlined_call_operand.hbm [shape: s32[16,96], index: 2, kind: input, shape index: {}]   ;;  %s1718_s3 = inlined_call_operand.hbm [shape: f32[16,128], index: 3, kind: output, shape index: {}]  }
   0x1   :  { %1719 = sst [smem:[#allocation14_spill]] %s1715_s0 }
   0x2   :  { %8 = vsyncpa [#allocation4], 0 }
   0x3   :  { %10 = vsyncpa [#allocation4 + $0x1], 0 }
   0x4   :  { %11 = vsyncpa [#allocation7], 0 }
   0x5   :  { %12 = vsyncpa [#allocation5], 0 }
   0x6   :  { %14 = vsyncpa [#allocation5 + $0x1], 0  ;;  %s1361_s12 = smov 0   ;;  %s1363_s13 = smov 0  }
   0x7   :  { %s1365_s14 = smov 0   ;;  %s1367_s15 = smov 0  }
   0x8 LB: > { %s1382_s16 = sadd.s32 1, %s1331_s15   ;;  %s27_s17 = sadd.s32 1, %s1327_s14  ;;  %s1331_s15 = sphi %s1367_s15, %s1731_s15   ;;  %s1327_s14 = sphi %s1365_s14, %s1730_s14   ;;  %s1323_s13 = sphi %s1363_s13, %s1729_s13   ;;  %s1319_s12 = sphi %s1361_s12, %s1728_s12  }
   0x9   : > { %s24_s18 = ssub.s32 %s1331_s15, %s1382_s16  ;;  %p34_p0 = scmp.ne.s32.totalorder %s1327_s14, %s1323_s13 }
   0xa   : > { %p25_p1 = scmp.eq.s32.totalorder %s24_s18, 0  ;;  %p35_p2 = scmp.eq.s32.totalorder %s1331_s15, 0 }
   0xb   : > { %p1060_p5 = scmp.lt.s32.totalorder %s1331_s15, 2  ;;  %s151_s21 = sand.u32 1, %s1331_s15  }
   0xc   : > { %s1391_s19 = scalar_select %p25_p1, %s1327_s14, %s27_s17  }
   0xd   : > { %p1396_p3 = por %p35_p2, %p34_p0  ;;  %s153_s22 = sand.u32 1, %s1327_s14  }
   0xe   : > { %s999_s23 = sshll.u32 %s153_s22, 6  ;;  %s1000_s24 = sshll.u32 %s1331_s15, 3 }
   0xf   : > { %s1721_s0 = sld [smem:[#allocation14_spill]]  ;;  %s155_s29 = scalar_lea.vmem [#allocation3], %s999_s23 }
  0x10   : > { %s162_s30 = sshll.u32 %s155_s29, 4  ;;  %p1414_p6 = pnand %p1060_p5, %p1396_p3  ;;  %s163_s30 = int_to_ptr.vmem [resolvable:$true] %s162_s30 }
  0x11   : > { %s1419_s5 = sadd.s32 4294967295, %s1331_s15   ;;  %s1421_s6 = scalar_lea.sflag [#allocation4], %s151_s21 }
  0x12   : > { %p1171_p8 = pneg %p1414_p6 }
  0x15   : > { %s159_s27 = scalar_lea.hbm %s1721_s0, %s1000_s24  ;;  %s1174_s11 = scalar_lea.hbm %s1721_s0, 128 }
  0x16   : > { %s160_s28 = sshll.u32 %s159_s27, 4  ;;  %s161_s28 = int_to_ptr.hbm [resolvable:$true] %s160_s28 }
  0x17   : > { %s1167_s7 = sshra.s32 %s161_s28, 4  ;;  %s1168_s7 = int_to_ptr.hbm [resolvable:$true] %s1167_s7 }
  0x18   : > { %s1169_s8 = scalar_lea.hbm %s1168_s7, 64  ;;  %p1175_p11 = scmp.lt.s32.totalorder %s1168_s7, %s1721_s0 }
  0x19   : > { %p1170_p7 = scmp.ne.s32.totalorder %s1168_s7, %s1169_s8  ;;  %p1176_p12 = scmp.lt.s32.totalorder %s1174_s11, %s1169_s8 }
  0x1b   : > { %p1172_p9 = pnand %p1171_p8, %p1170_p7  ;;  %p1177_p13 = por %p1176_p12, %p1175_p11 }
  0x1d   : > { %p1173_p10 = pneg %p1172_p9 }
  0x1f   : > { %p1178_p1 = pnand %p1177_p13, %p1173_p10 }
  0x21   : > { %1181 = shalt.err (!%p1178_p1)
}
  0x22   : > { %s1333_s20 = smov 256   ;;  %s1334_s21 = smov 128  }
  0x23   : > { %s1335_s23 = smov 8   ;;  %s995_s25 = sadd.s32 4294967294, %s1331_s15  }
  0x24   : > { %1051 = dma.hbm_to_vmem [thread:$0]  (!%p1414_p6), %s161_s28, 1024, %s163_s30, %s1421_s6, %s1333_s20, %s1334_s21, %s1335_s23  }
  0x25   : > { %p40_p2 = scmp.ne.s32.totalorder %s1323_s13, %s1319_s12  ;;  %p41_p3 = scmp.eq.s32.totalorder %s1419_s5, 0 }
  0x26   : > { %p111_p5 = scmp.eq.s32.totalorder %s1419_s5, 1  ;;  %p117_p7 = scmp.eq.s32.totalorder %s995_s25, 1 }
  0x27   : > { %p996_p9 = scmp.ge.s32.totalorder %s1331_s15, 1  ;;  %p1447_p10 = por %p41_p3, %p40_p2 }
  0x28   : > { %p1454_p11 = por %p111_p5, %p34_p0  ;;  %p1458_p12 = por %p117_p7, %p40_p2 }
  0x29   : > { %p124_p13 = scmp.lt.s32.totalorder %s1331_s15, 3  ;;  %s135_s7 = sshll.u32 %s1716_s1, 4  ;;  %s136_s7 = int_to_ptr.hbm [resolvable:$true] %s135_s7 }
  0x2a   : > { %s1001_s9 = sshll.u32 %s153_s22, 3  ;;  %s1336_s10 = smov [#allocation6]  }
  0x2b   : > { %p1466_p1 = pnand %p996_p9, %p124_p13  ;;  %s137_s11 = sshll.u32 %s1336_s10, 4  ;;  %s138_s11 = int_to_ptr.vmem [resolvable:$true] %s137_s11 }
  0x2c   : > { %s180_s20 = scalar_lea.hbm %s1717_s2, %s1000_s24  ;;  %s176_s29 = scalar_lea.vmem [#allocation8], %s1001_s9 }
  0x2d   : > { %p1044_p0 = pneg %p1466_p1  ;;  %s182_s25 = sshll.u32 %s180_s20, 4  ;;  %s183_s25 = int_to_ptr.hbm [resolvable:$true] %s182_s25 }
  0x2e   : > { %s184_s30 = sshll.u32 %s176_s29, 4  ;;  %s1227_s22 = sshra.s32 %s183_s25, 4  ;;  %s185_s30 = int_to_ptr.vmem [resolvable:$true] %s184_s30  ;;  %s1228_s22 = int_to_ptr.hbm [resolvable:$true] %s1227_s22 }
  0x2f   : > { %p1045_p2 = pnand %p1044_p0, %p41_p3  ;;  %s1229_s10 = scalar_lea.hbm %s1228_s22, 8 }
  0x30   : > { %p1230_p5 = scmp.ne.s32.totalorder %s1228_s22, %s1229_s10  ;;  %s1234_s24 = scalar_lea.hbm %s1717_s2, 16 }
  0x31   : > { %1047 = dma.hbm_to_vmem [thread:$0]  (!%p1045_p2), %s136_s7, 512, %s138_s11, [#allocation7], %s1334_s21, %s1334_s21, %s1335_s23  }
  0x32   : > { %p1232_p7 = pnand %p1230_p5, %p1171_p8  ;;  %p1235_p13 = scmp.lt.s32.totalorder %s1228_s22, %s1717_s2 }
  0x33   : > { %p1236_p0 = scmp.lt.s32.totalorder %s1234_s24, %s1229_s10 }
  0x34   : > { %p1233_p9 = pneg %p1232_p7 }
  0x35   : > { %p1237_p4 = por %p1236_p0, %p1235_p13 }
  0x37   : > { %p1238_p2 = pnand %p1237_p4, %p1233_p9 }
  0x39   : > { %1241 = shalt.err (!%p1238_p2)
}
  0x3a   : > { %1054 = dma.hbm_to_vmem [thread:$0]  (!%p1414_p6), %s183_s25, 128, %s185_s30, %s1421_s6  }
  0x3b   : > { %193 = sbr.rel (%p1466_p1) target bundleno = 4742 (0x1286), region = 32  ;;  %s195_s0 = sand.u32 (!%p1466_p1), 1, %s1419_s5  }
  0x3c   : > { %s1500_s21 = sand.u32 (!%p1466_p1), 1, %s1323_s13   ;;  %s196_s7 = scalar_lea.sflag (!%p1466_p1), [#allocation4], %s195_s0 }
  0x3d   : > { %s1004_s23 = sshll.u32 (!%p1466_p1), %s1500_s21, 6 }
  0x3e   : > { %s1503_s11 = scalar_lea.vmem (!%p1466_p1), [#allocation3], %s1004_s23 }
  0x40   : > { %1302 = dma.done.wait (%p1447_p10), %s196_s7, 1024  }
  0x41   : > { %1304 = vsyncadd (%p1447_p10), %s196_s7, 4294966272 }
  0x42   : > { %1306 = dma.done.wait (%p41_p3), [#allocation7], 512  }
  0x43   : > { %1308 = vsyncadd (%p41_p3), [#allocation7], 4294966784  ;;  %s1006_s4 = sshll.u32 %s1500_s21, 3 }
  0x44   : > { %s1516_s6 = scalar_lea.vmem [#allocation8], %s1006_s4 }
  0x45   : > { %1310 = dma.done.wait (%p1447_p10), %s196_s7, 128  }
  0x46   : > { %1312 = vsyncadd (%p1447_p10), %s196_s7, 4294967168  ;;  %vm248_vm0 = vcmask 785408   ;;  %v1337_v0 = vmov 0.0   ;;  %v246_v1 = vld [vmem:[#allocation6 + $0x18] sm:$0xff]  ;;  %v245_v2 = vld [vmem:[#allocation6 + $0x10] sm:$0xff]  ;;  %s1338_s26 = smov 64  }
  0x47   : > { %249 = vst.msk [vmem:[#allocation2] sm:$0xff] %vm248_vm0, %v1337_v0  ;;  %267 = vmatpush.msra.mxu0 %v246_v1  ;;  %346 = vmatpush.msra.mxu1 %v246_v1  ;;  %v244_v3 = vld [vmem:[#allocation6 + $0x8] sm:$0xff]  ;;  %v243_v4 = vld [vmem:[#allocation6] sm:$0xff]  ;;  %s1339_s8 = smov 32   ;;  %vm251_vm5 = vcmask 261120   ;;  %v1012_v57 = vld [vmem:[%s1503_s11 + $0x10] sm:$0xff] }
  0x48   : > { %424 = vmatpush.msra.mxu2 %v246_v1  ;;  %502 = vmatpush.msra.mxu3 %v246_v1  ;;  %v250_v5 = vld [vmem:[%s1503_s11] sm:$0xff]  ;;  %v1009_v31 = vld [vmem:[%s1503_s11 + $0x8] sm:$0xff]  ;;  %s1340_s20 = smov 96   ;;  %s1031_s25 = sshll.u32 %s1419_s5, 3 }
  0x49   : > { %268 = vmatpush.msra.mxu0 %v245_v2  ;;  %347 = vmatpush.msra.mxu1 %v245_v2  ;;  %s890_s22 = scalar_lea.hbm %s1718_s3, %s1031_s25  ;;  %s242_s10 = scalar_lea.vmem [#allocation9], %s1006_s4 }
  0x4a   : > { %425 = vmatpush.msra.mxu2 %v245_v2  ;;  %503 = vmatpush.msra.mxu3 %v245_v2  ;;  %s892_s17 = sshll.u32 %s242_s10, 4  ;;  %s894_s24 = sshll.u32 %s890_s22, 4  ;;  %s893_s17 = int_to_ptr.vmem [resolvable:$true] %s892_s17  ;;  %s895_s24 = int_to_ptr.hbm [resolvable:$true] %s894_s24 }
  0x4b   : > { %269 = vmatpush.msra.mxu0 %v244_v3  ;;  %348 = vmatpush.msra.mxu1 %v244_v3  ;;  %s880_s9 = scalar_lea.sflag [#allocation5], %s1500_s21  ;;  %s1271_s5 = sshra.s32 %s895_s24, 4  ;;  %s1272_s5 = int_to_ptr.hbm [resolvable:$true] %s1271_s5 }
  0x4c   : > { %426 = vmatpush.msra.mxu2 %v244_v3  ;;  %504 = vmatpush.msra.mxu3 %v244_v3  ;;  %s1273_s18 = scalar_lea.hbm %s1272_s5, 8  ;;  %s1277_s7 = scalar_lea.hbm %s1718_s3, 16 }
  0x4d   : > { %270 = vmatpush.msra.mxu0 %v243_v4  ;;  %349 = vmatpush.msra.mxu1 %v243_v4  ;;  %p1274_p4 = scmp.ne.s32.totalorder %s1272_s5, %s1273_s18  ;;  %p1278_p3 = scmp.lt.s32.totalorder %s1272_s5, %s1718_s3 }
  0x4e   : > { %271 = vmatmul.f32.vlgmr.msra.gmra.mxu0 %v1337_v0  ;;  %427 = vmatpush.msra.mxu2 %v243_v4  ;;  %p1279_p10 = scmp.lt.s32.totalorder %s1277_s7, %s1273_s18 }
  0x4f   : > { %505 = vmatpush.msra.mxu3 %v243_v4  ;;  %580 = vmatpush.msrb.mxu0 %v246_v1  ;;  %p1275_p6 = pnand %p1274_p4, %p1454_p11 }
  0x50   : > { %658 = vmatpush.msrb.mxu1 %v246_v1  ;;  %736 = vmatpush.msrb.mxu2 %v246_v1  ;;  %p1280_p1 = por %p1279_p10, %p1278_p3 }
  0x51   : > { %581 = vmatpush.msrb.mxu0 %v245_v2  ;;  %814 = vmatpush.msrb.mxu3 %v246_v1  ;;  %p1276_p8 = pneg %p1275_p6 }
  0x52   : > { %659 = vmatpush.msrb.mxu1 %v245_v2  ;;  %737 = vmatpush.msrb.mxu2 %v245_v2 }
  0x53   : > { %582 = vmatpush.msrb.mxu0 %v244_v3  ;;  %815 = vmatpush.msrb.mxu3 %v245_v2  ;;  %p1281_p5 = pnand %p1280_p1, %p1276_p8 }
  0x54   : > { %660 = vmatpush.msrb.mxu1 %v244_v3  ;;  %738 = vmatpush.msrb.mxu2 %v244_v3 }
  0x55   : > { %583 = vmatpush.msrb.mxu0 %v243_v4  ;;  %816 = vmatpush.msrb.mxu3 %v244_v3 }
  0x56   : > { %661 = vmatpush.msrb.mxu1 %v243_v4  ;;  %739 = vmatpush.msrb.mxu2 %v243_v4 }
  0x57   : > { %817 = vmatpush.msrb.mxu3 %v243_v4 }
  0xcb   : > { %v272_v6 = vpop.f32.mrf.mxu0 }
  0xcc   : > { %v275_v7 = vadd.f32 %v272_v6, %v250_v5 }
  0xce   : > { %1103 = vtanh.f32 %v275_v7  ;;  %v1008_v9 = vmul.f32 -1.442695, %v275_v7 }
  0xd0   : > { %1105 = vpow2.f32 %v1008_v9 }
  0xd4   : > { %v1104_v8 = vpop.eup %1103 }
  0xd5   : > { %298 = vrot.lane.b32.xlu0 %v1104_v8, %s1338_s26 }
  0xd6   : > { %v1106_v10 = vpop.eup %1105 }
  0xd7   : > { %v279_v11 = vadd.f32 1.0, %v1106_v10 }
  0xd9   : > { %1107 = vrcp.f32 %v279_v11  ;;  %v291_v17 = vand.u32 2147483648, %v279_v11  ;;  %vm285_vm2 = vweird.f32 %v279_v11  ;;  %v289_v18 = vand.u32 2147483647, %v279_v11 }
  0xdb   : > { %v292_v20 = vor.u32 1.1754944e-38, %v291_v17  ;;  %vm290_vm4 = vcmp.eq.f32.partialorder %v289_v18, 8.507059e+37 }
  0xdf   : > { %v1108_v12 = vpop.eup %1107 }
  0xe0   : > { %v281_v13 = vmul.f32 %v1108_v12, %v279_v11  ;;  %vm286_vm1 = vweird.f32 %v1108_v12 }
  0xe1   : > { %vm287_vm3 = vmor %vm285_vm2, %vm286_vm1 }
  0xe2   : > { %v282_v14 = vsub.f32 1.0, %v281_v13 }
  0xe4   : > { %v283_v15 = vmul.f32 %v1108_v12, %v282_v14 }
  0xe6   : > { %v284_v16 = vadd.f32 %v1108_v12, %v283_v15 }
  0xe8   : > { %v288_v19 = vsel %vm287_vm3, %v1108_v12, %v284_v16 }
  0xe9   : > { %v293_v22 = vsel %vm290_vm4, %v292_v20, %v288_v19  ;;  %v1015_v19 = vld [vmem:[%s1503_s11 + $0x18] sm:$0xff] }
  0xea   : > { %v296_v24 = vmul.f32 0.0, %v293_v22 }
 0x147   : > { %v299_v21 = vpop.permute.xlu0 %298 }
 0x148   : > { %v301_v23 = vmul.f32 %v299_v21, %v293_v22 }
 0x14a   : > { %303 = vrot.lane.b32.xlu0 %v301_v23, %s1339_s8 }
 0x1bc   : > { %v304_v25 = vpop.permute.xlu0 %303 }
 0x1bd   : > { %v306_v26 = vadd.f32 %v304_v25, %v296_v24 }
 0x1bf   : > { %1109 = vtanh.f32 %v306_v26 }
 0x1c5   : > { %v1110_v27 = vpop.eup %1109 }
 0x1c6   : > { %309 = vrot.lane.b32.xlu1 %v1110_v27, %s1338_s26 }
 0x238   : > { %v310_v28 = vpop.permute.xlu1 %309 }
 0x239   : > { %v1527_v29 = vmul.f32 %v310_v28, %v293_v22 }
 0x23b   : > { %314 = vrot.lane.b32.xlu1 %v1527_v29, %s1339_s8 }
 0x2ad   : > { %v1531_v30 = vpop.permute.xlu1 %314 }
 0x2ae   : > { %1010 = vmatmul.msk.f32.vlgmr.msra.gmra.mxu1 %vm251_vm5, %v1531_v30 }
 0x32b   : > { %v351_v32 = vpop.f32.mrf.mxu1 }
 0x32c   : > { %v354_v33 = vadd.f32 %v1009_v31, %v351_v32 }
 0x32e   : > { %1111 = vtanh.f32 %v354_v33  ;;  %v1011_v35 = vmul.f32 -1.442695, %v354_v33 }
 0x330   : > { %1113 = vpow2.f32 %v1011_v35 }
 0x334   : > { %v1112_v34 = vpop.eup %1111 }
 0x335   : > { %377 = vrot.lane.b32.xlu2 %v1112_v34, %s1338_s26 }
 0x336   : > { %v1114_v36 = vpop.eup %1113 }
 0x337   : > { %v358_v37 = vadd.f32 1.0, %v1114_v36 }
 0x339   : > { %1115 = vrcp.f32 %v358_v37  ;;  %v370_v43 = vand.u32 2147483648, %v358_v37  ;;  %vm364_vm7 = vweird.f32 %v358_v37  ;;  %v368_v44 = vand.u32 2147483647, %v358_v37 }
 0x33b   : > { %v371_v46 = vor.u32 1.1754944e-38, %v370_v43  ;;  %vm369_vm9 = vcmp.eq.f32.partialorder %v368_v44, 8.507059e+37 }
 0x33f   : > { %v1116_v38 = vpop.eup %1115 }
 0x340   : > { %v360_v39 = vmul.f32 %v1116_v38, %v358_v37  ;;  %vm365_vm6 = vweird.f32 %v1116_v38 }
 0x341   : > { %vm366_vm8 = vmor %vm364_vm7, %vm365_vm6 }
 0x342   : > { %v361_v40 = vsub.f32 1.0, %v360_v39 }
 0x344   : > { %v362_v41 = vmul.f32 %v1116_v38, %v361_v40 }
 0x346   : > { %v363_v42 = vadd.f32 %v1116_v38, %v362_v41 }
 0x348   : > { %v367_v45 = vsel %vm366_vm8, %v1116_v38, %v363_v42 }
 0x349   : > { %v372_v48 = vsel %vm369_vm9, %v371_v46, %v367_v45 }
 0x34a   : > { %v375_v50 = vmul.f32 %v372_v48, %v306_v26 }
 0x38f   : > { %v378_v47 = vpop.permute.xlu2 %377 }
 0x390   : > { %v380_v49 = vmul.f32 %v378_v47, %v372_v48  ;;  %v1018_v47 = vld [vmem:[%s1503_s11 + $0x20] sm:$0xff] }
 0x392   : > { %382 = vrot.lane.b32.xlu2 %v380_v49, %s1339_s8 }
 0x3ec   : > { %v383_v51 = vpop.permute.xlu2 %382 }
 0x3ed   : > { %v385_v52 = vadd.f32 %v383_v51, %v375_v50 }
 0x3ef   : > { %1117 = vtanh.f32 %v385_v52 }
 0x3f5   : > { %v1118_v53 = vpop.eup %1117 }
 0x3f6   : > { %388 = vrot.lane.b32.xlu0 %v1118_v53, %s1338_s26 }
 0x468   : > { %v389_v54 = vpop.permute.xlu0 %388 }
 0x469   : > { %v1539_v55 = vmul.f32 %v389_v54, %v372_v48 }
 0x46b   : > { %393 = vrot.lane.b32.xlu1 %v1539_v55, %s1339_s8 }
 0x4dd   : > { %v1543_v56 = vpop.permute.xlu1 %393 }
 0x4de   : > { %1013 = vmatmul.msk.f32.vlgmr.msra.gmra.mxu2 %vm251_vm5, %v1543_v56 }
 0x561   : > { %v429_v58 = vpop.f32.mrf.mxu2 }
 0x562   : > { %v432_v59 = vadd.f32 %v1012_v57, %v429_v58 }
 0x564   : > { %1119 = vtanh.f32 %v432_v59  ;;  %v1014_v61 = vmul.f32 -1.442695, %v432_v59 }
 0x566   : > { %1121 = vpow2.f32 %v1014_v61 }
 0x56a   : > { %v1120_v60 = vpop.eup %1119 }
 0x56b   : > { %455 = vrot.lane.b32.xlu2 %v1120_v60, %s1338_s26 }
 0x56c   : > { %v1122_v62 = vpop.eup %1121 }
 0x56d   : > { %v436_v63 = vadd.f32 1.0, %v1122_v62 }
 0x56f   : > { %1123 = vrcp.f32 %v436_v63  ;;  %v448_v5 = vand.u32 2147483648, %v436_v63  ;;  %vm442_vm11 = vweird.f32 %v436_v63  ;;  %v446_v6 = vand.u32 2147483647, %v436_v63 }
 0x571   : > { %v449_v8 = vor.u32 1.1754944e-38, %v448_v5  ;;  %vm447_vm13 = vcmp.eq.f32.partialorder %v446_v6, 8.507059e+37 }
 0x575   : > { %v1124_v0 = vpop.eup %1123 }
 0x576   : > { %v438_v1 = vmul.f32 %v1124_v0, %v436_v63  ;;  %vm443_vm10 = vweird.f32 %v1124_v0 }
 0x577   : > { %vm444_vm12 = vmor %vm442_vm11, %vm443_vm10 }
 0x578   : > { %v439_v2 = vsub.f32 1.0, %v438_v1 }
 0x57a   : > { %v440_v3 = vmul.f32 %v1124_v0, %v439_v2 }
 0x57c   : > { %v441_v4 = vadd.f32 %v1124_v0, %v440_v3 }
 0x57e   : > { %v445_v7 = vsel %vm444_vm12, %v1124_v0, %v441_v4 }
 0x57f   : > { %v450_v10 = vsel %vm447_vm13, %v449_v8, %v445_v7 }
 0x580   : > { %v453_v12 = vmul.f32 %v450_v10, %v385_v52 }
 0x5c5   : > { %v456_v9 = vpop.permute.xlu2 %455 }
 0x5c6   : > { %v458_v11 = vmul.f32 %v456_v9, %v450_v10 }
 0x5c8   : > { %460 = vrot.lane.b32.xlu0 %v458_v11, %s1339_s8  ;;  %v1021_v11 = vld [vmem:[%s1503_s11 + $0x28] sm:$0xff] }
 0x63a   : > { %v461_v13 = vpop.permute.xlu0 %460 }
 0x63b   : > { %v463_v14 = vadd.f32 %v461_v13, %v453_v12 }
 0x63d   : > { %1125 = vtanh.f32 %v463_v14 }
 0x643   : > { %v1126_v15 = vpop.eup %1125 }
 0x644   : > { %466 = vrot.lane.b32.xlu1 %v1126_v15, %s1338_s26 }
 0x6b6   : > { %v467_v16 = vpop.permute.xlu1 %466 }
 0x6b7   : > { %v1551_v17 = vmul.f32 %v467_v16, %v450_v10 }
 0x6b9   : > { %471 = vrot.lane.b32.xlu2 %v1551_v17, %s1339_s8 }
 0x713   : > { %v1555_v18 = vpop.permute.xlu2 %471 }
 0x714   : > { %1016 = vmatmul.msk.f32.vlgmr.msra.gmra.mxu3 %vm251_vm5, %v1555_v18 }
 0x797   : > { %v507_v20 = vpop.f32.mrf.mxu3 }
 0x798   : > { %v510_v21 = vadd.f32 %v1015_v19, %v507_v20 }
 0x79a   : > { %1127 = vtanh.f32 %v510_v21  ;;  %v1017_v23 = vmul.f32 -1.442695, %v510_v21 }
 0x79c   : > { %1129 = vpow2.f32 %v1017_v23 }
 0x7a0   : > { %v1128_v22 = vpop.eup %1127 }
 0x7a1   : > { %533 = vrot.lane.b32.xlu0 %v1128_v22, %s1338_s26 }
 0x7a2   : > { %v1130_v24 = vpop.eup %1129 }
 0x7a3   : > { %v514_v25 = vadd.f32 1.0, %v1130_v24 }
 0x7a5   : > { %1131 = vrcp.f32 %v514_v25  ;;  %v526_v33 = vand.u32 2147483648, %v514_v25  ;;  %vm520_vm15 = vweird.f32 %v514_v25  ;;  %v524_v34 = vand.u32 2147483647, %v514_v25 }
 0x7a7   : > { %v527_v36 = vor.u32 1.1754944e-38, %v526_v33  ;;  %vm525_vm2 = vcmp.eq.f32.partialorder %v524_v34, 8.507059e+37 }
 0x7ab   : > { %v1132_v26 = vpop.eup %1131 }
 0x7ac   : > { %v516_v27 = vmul.f32 %v1132_v26, %v514_v25  ;;  %vm521_vm14 = vweird.f32 %v1132_v26 }
 0x7ad   : > { %vm522_vm1 = vmor %vm520_vm15, %vm521_vm14 }
 0x7ae   : > { %v517_v28 = vsub.f32 1.0, %v516_v27 }
 0x7b0   : > { %v518_v31 = vmul.f32 %v1132_v26, %v517_v28 }
 0x7b2   : > { %v519_v32 = vadd.f32 %v1132_v26, %v518_v31 }
 0x7b4   : > { %v523_v35 = vsel %vm522_vm1, %v1132_v26, %v519_v32 }
 0x7b5   : > { %v528_v38 = vsel %vm525_vm2, %v527_v36, %v523_v35 }
 0x7b6   : > { %v531_v40 = vmul.f32 %v528_v38, %v463_v14 }
 0x813   : > { %v534_v37 = vpop.permute.xlu0 %533 }
 0x814   : > { %v536_v39 = vmul.f32 %v534_v37, %v528_v38 }
 0x816   : > { %538 = vrot.lane.b32.xlu1 %v536_v39, %s1339_s8 }
 0x888   : > { %v539_v41 = vpop.permute.xlu1 %538 }
 0x889   : > { %v541_v42 = vadd.f32 %v539_v41, %v531_v40  ;;  %v1024_v41 = vld [vmem:[%s1503_s11 + $0x30] sm:$0xff] }
 0x88b   : > { %1133 = vtanh.f32 %v541_v42 }
 0x891   : > { %v1134_v43 = vpop.eup %1133 }
 0x892   : > { %544 = vrot.lane.b32.xlu2 %v1134_v43, %s1338_s26 }
 0x8ec   : > { %v545_v44 = vpop.permute.xlu2 %544 }
 0x8ed   : > { %v1563_v45 = vmul.f32 %v545_v44, %v528_v38 }
 0x8ef   : > { %549 = vrot.lane.b32.xlu0 %v1563_v45, %s1339_s8 }
 0x961   : > { %v1567_v46 = vpop.permute.xlu0 %549 }
 0x962   : > { %1019 = vmatmul.msk.f32.vlgmr.msrb.gmra.mxu0 %vm251_vm5, %v1567_v46 }
 0x9df   : > { %v585_v48 = vpop.f32.mrf.mxu0 }
 0x9e0   : > { %v588_v49 = vadd.f32 %v1018_v47, %v585_v48 }
 0x9e2   : > { %1135 = vtanh.f32 %v588_v49  ;;  %v1020_v51 = vmul.f32 -1.442695, %v588_v49 }
 0x9e4   : > { %1137 = vpow2.f32 %v1020_v51 }
 0x9e8   : > { %v1136_v50 = vpop.eup %1135 }
 0x9e9   : > { %611 = vrot.lane.b32.xlu1 %v1136_v50, %s1338_s26 }
 0x9ea   : > { %v1138_v52 = vpop.eup %1137 }
 0x9eb   : > { %v592_v53 = vadd.f32 1.0, %v1138_v52 }
 0x9ed   : > { %1139 = vrcp.f32 %v592_v53  ;;  %v604_v61 = vand.u32 2147483648, %v592_v53  ;;  %vm598_vm4 = vweird.f32 %v592_v53  ;;  %v602_v62 = vand.u32 2147483647, %v592_v53 }
 0x9ef   : > { %v605_v0 = vor.u32 1.1754944e-38, %v604_v61  ;;  %vm603_vm7 = vcmp.eq.f32.partialorder %v602_v62, 8.507059e+37 }
 0x9f3   : > { %v1140_v54 = vpop.eup %1139 }
 0x9f4   : > { %v594_v57 = vmul.f32 %v1140_v54, %v592_v53  ;;  %vm599_vm3 = vweird.f32 %v1140_v54 }
 0x9f5   : > { %vm600_vm6 = vmor %vm598_vm4, %vm599_vm3 }
 0x9f6   : > { %v595_v58 = vsub.f32 1.0, %v594_v57 }
 0x9f8   : > { %v596_v59 = vmul.f32 %v1140_v54, %v595_v58 }
 0x9fa   : > { %v597_v60 = vadd.f32 %v1140_v54, %v596_v59 }
 0x9fc   : > { %v601_v63 = vsel %vm600_vm6, %v1140_v54, %v597_v60  ;;  %vm324_vm6 = vcmask 523264  }
 0x9fd   : > { %v606_v2 = vsel %vm603_vm7, %v605_v0, %v601_v63 }
 0x9fe   : > { %v609_v4 = vmul.f32 %v606_v2, %v541_v42 }
 0xa5b   : > { %v612_v1 = vpop.permute.xlu1 %611 }
 0xa5c   : > { %v614_v3 = vmul.f32 %v612_v1, %v606_v2 }
 0xa5e   : > { %616 = vrot.lane.b32.xlu2 %v614_v3, %s1339_s8 }
 0xab8   : > { %v617_v5 = vpop.permute.xlu2 %616 }
 0xab9   : > { %v619_v6 = vadd.f32 %v617_v5, %v609_v4 }
 0xabb   : > { %1141 = vtanh.f32 %v619_v6 }
 0xac1   : > { %v1142_v7 = vpop.eup %1141 }
 0xac2   : > { %622 = vrot.lane.b32.xlu0 %v1142_v7, %s1338_s26  ;;  %v1027_v7 = vld [vmem:[%s1503_s11 + $0x38] sm:$0xff] }
 0xb34   : > { %v623_v8 = vpop.permute.xlu0 %622 }
 0xb35   : > { %v1575_v9 = vmul.f32 %v623_v8, %v606_v2 }
 0xb37   : > { %627 = vrot.lane.b32.xlu1 %v1575_v9, %s1339_s8 }
 0xba9   : > { %v1579_v10 = vpop.permute.xlu1 %627 }
 0xbaa   : > { %1022 = vmatmul.msk.f32.vlgmr.msrb.gmra.mxu1 %vm251_vm5, %v1579_v10 }
 0xc27   : > { %v663_v12 = vpop.f32.mrf.mxu1 }
 0xc28   : > { %v666_v13 = vadd.f32 %v1021_v11, %v663_v12 }
 0xc2a   : > { %1143 = vtanh.f32 %v666_v13  ;;  %v1023_v15 = vmul.f32 -1.442695, %v666_v13 }
 0xc2c   : > { %1145 = vpow2.f32 %v1023_v15 }
 0xc30   : > { %v1144_v14 = vpop.eup %1143 }
 0xc31   : > { %689 = vrot.lane.b32.xlu2 %v1144_v14, %s1338_s26 }
 0xc32   : > { %v1146_v16 = vpop.eup %1145 }
 0xc33   : > { %v670_v19 = vadd.f32 1.0, %v1146_v16 }
 0xc35   : > { %1147 = vrcp.f32 %v670_v19  ;;  %v682_v25 = vand.u32 2147483648, %v670_v19  ;;  %vm676_vm9 = vweird.f32 %v670_v19  ;;  %v680_v26 = vand.u32 2147483647, %v670_v19 }
 0xc37   : > { %v683_v28 = vor.u32 1.1754944e-38, %v682_v25  ;;  %vm681_vm11 = vcmp.eq.f32.partialorder %v680_v26, 8.507059e+37 }
 0xc3b   : > { %v1148_v20 = vpop.eup %1147 }
 0xc3c   : > { %v672_v21 = vmul.f32 %v1148_v20, %v670_v19  ;;  %vm677_vm8 = vweird.f32 %v1148_v20 }
 0xc3d   : > { %vm678_vm10 = vmor %vm676_vm9, %vm677_vm8 }
 0xc3e   : > { %v673_v22 = vsub.f32 1.0, %v672_v21 }
 0xc40   : > { %v674_v23 = vmul.f32 %v1148_v20, %v673_v22 }
 0xc42   : > { %v675_v24 = vadd.f32 %v1148_v20, %v674_v23 }
 0xc44   : > { %v679_v27 = vsel %vm678_vm10, %v1148_v20, %v675_v24 }
 0xc45   : > { %v684_v32 = vsel %vm681_vm11, %v683_v28, %v679_v27 }
 0xc46   : > { %v687_v34 = vmul.f32 %v684_v32, %v619_v6 }
 0xc8b   : > { %v690_v31 = vpop.permute.xlu2 %689 }
 0xc8c   : > { %v692_v33 = vmul.f32 %v690_v31, %v684_v32  ;;  %v1621_v31 = vld [vmem:[%s1516_s6] sm:$0xff] }
 0xc8d   : > { %vm326_vm7 = vcmp.eq.s32.totalorder %v1621_v31, 0  ;;  %vm404_vm8 = vcmp.eq.s32.totalorder %v1621_v31, 1  ;;  %vm482_vm9 = vcmp.eq.s32.totalorder %v1621_v31, 2  ;;  %vm560_vm10 = vcmp.eq.s32.totalorder %v1621_v31, 3 }
 0xc8e   : > { %694 = vrot.lane.b32.xlu0 %v692_v33, %s1339_s8  ;;  %v327_v33 = vld [vmem:[#allocation2] sm:$0xff]  ;;  %vm638_vm11 = vcmp.eq.s32.totalorder %v1621_v31, 4 }
 0xd00   : > { %v695_v35 = vpop.permute.xlu0 %694 }
 0xd01   : > { %v697_v36 = vadd.f32 %v695_v35, %v687_v34 }
 0xd03   : > { %1149 = vtanh.f32 %v697_v36 }
 0xd09   : > { %v1150_v37 = vpop.eup %1149 }
 0xd0a   : > { %700 = vrot.lane.b32.xlu1 %v1150_v37, %s1338_s26 }
 0xd7c   : > { %v701_v38 = vpop.permute.xlu1 %700 }
 0xd7d   : > { %v1587_v39 = vmul.f32 %v701_v38, %v684_v32 }
 0xd7f   : > { %705 = vrot.lane.b32.xlu2 %v1587_v39, %s1339_s8 }
 0xdd9   : > { %v1591_v40 = vpop.permute.xlu2 %705 }
 0xdda   : > { %1025 = vmatmul.msk.f32.vlgmr.msrb.gmra.mxu2 %vm251_vm5, %v1591_v40 }
 0xe5d   : > { %v741_v42 = vpop.f32.mrf.mxu2 }
 0xe5e   : > { %v744_v43 = vadd.f32 %v1024_v41, %v741_v42 }
 0xe60   : > { %1151 = vtanh.f32 %v744_v43  ;;  %v1026_v47 = vmul.f32 -1.442695, %v744_v43 }
 0xe62   : > { %1153 = vpow2.f32 %v1026_v47 }
 0xe66   : > { %v1152_v44 = vpop.eup %1151 }
 0xe67   : > { %767 = vrot.lane.b32.xlu0 %v1152_v44, %s1338_s26 }
 0xe68   : > { %v1154_v48 = vpop.eup %1153 }
 0xe69   : > { %v748_v49 = vadd.f32 1.0, %v1154_v48 }
 0xe6b   : > { %1155 = vrcp.f32 %v748_v49  ;;  %v760_v57 = vand.u32 2147483648, %v748_v49  ;;  %vm754_vm13 = vweird.f32 %v748_v49  ;;  %v758_v58 = vand.u32 2147483647, %v748_v49 }
 0xe6d   : > { %v761_v60 = vor.u32 1.1754944e-38, %v760_v57  ;;  %vm759_vm15 = vcmp.eq.f32.partialorder %v758_v58, 8.507059e+37 }
 0xe71   : > { %v1156_v50 = vpop.eup %1155 }
 0xe72   : > { %v750_v51 = vmul.f32 %v1156_v50, %v748_v49  ;;  %vm755_vm12 = vweird.f32 %v1156_v50 }
 0xe73   : > { %vm756_vm14 = vmor %vm754_vm13, %vm755_vm12  ;;  %vm716_vm12 = vcmp.eq.s32.totalorder %v1621_v31, 5  ;;  %vm794_vm13 = vcmp.eq.s32.totalorder %v1621_v31, 6 }
 0xe74   : > { %v751_v52 = vsub.f32 1.0, %v750_v51 }
 0xe76   : > { %v752_v53 = vmul.f32 %v1156_v50, %v751_v52 }
 0xe78   : > { %v753_v54 = vadd.f32 %v1156_v50, %v752_v53 }
 0xe7a   : > { %v757_v59 = vsel %vm756_vm14, %v1156_v50, %v753_v54  ;;  %vm872_vm14 = vcmp.eq.s32.totalorder %v1621_v31, 7 }
 0xe7b   : > { %v762_v62 = vsel %vm759_vm15, %v761_v60, %v757_v59 }
 0xe7c   : > { %v765_v0 = vmul.f32 %v762_v62, %v697_v36 }
 0xed9   : > { %v768_v61 = vpop.permute.xlu0 %767 }
 0xeda   : > { %v770_v63 = vmul.f32 %v768_v61, %v762_v62 }
 0xedc   : > { %772 = vrot.lane.b32.xlu1 %v770_v63, %s1339_s8 }
 0xf4e   : > { %v773_v1 = vpop.permute.xlu1 %772 }
 0xf4f   : > { %v775_v2 = vadd.f32 %v773_v1, %v765_v0 }
 0xf51   : > { %1157 = vtanh.f32 %v775_v2 }
 0xf57   : > { %v1158_v3 = vpop.eup %1157 }
 0xf58   : > { %778 = vrot.lane.b32.xlu2 %v1158_v3, %s1338_s26 }
 0xfb2   : > { %v779_v4 = vpop.permute.xlu2 %778 }
 0xfb3   : > { %v781_v5 = vmul.f32 %v779_v4, %v762_v62 }
 0xfb5   : > { %783 = vrot.lane.b32.xlu0 %v781_v5, %s1339_s8 }
 0xfbd   : > { %317 = vrot.lane.b32.xlu0 %v1527_v29, %s1338_s26 }
 0xfc5   : > { %399 = vrot.lane.b32.xlu0 %v1539_v55, %s1340_s20 }
0x1027   : > { %v1604_v6 = vpop.permute.xlu0 %783 }
0x1028   : > { %1028 = vmatmul.msk.f32.vlgmr.msrb.gmra.mxu3 %vm251_vm5, %v1604_v6 }
0x102f   : > { %v318_v32 = vpop.permute.xlu0 %317 }
0x1030   : > { %v323_v34 = vsel %vm251_vm5, %v1531_v30, %v318_v32 }
0x10ab   : > { %v819_v8 = vpop.f32.mrf.mxu3 }
0x10ac   : > { %v822_v11 = vadd.f32 %v1027_v7, %v819_v8 }
0x10ae   : > { %1159 = vtanh.f32 %v822_v11  ;;  %v1029_v13 = vmul.f32 -1.442695, %v822_v11 }
0x10b0   : > { %1161 = vpow2.f32 %v1029_v13 }
0x10b4   : > { %v1160_v12 = vpop.eup %1159 }
0x10b5   : > { %845 = vrot.lane.b32.xlu1 %v1160_v12, %s1338_s26 }
0x10b6   : > { %v1162_v14 = vpop.eup %1161 }
0x10b7   : > { %v826_v15 = vadd.f32 1.0, %v1162_v14 }
0x10b9   : > { %1163 = vrcp.f32 %v826_v15  ;;  %v838_v22 = vand.u32 2147483648, %v826_v15  ;;  %vm832_vm2 = vweird.f32 %v826_v15  ;;  %v836_v23 = vand.u32 2147483647, %v826_v15 }
0x10bb   : > { %v839_v25 = vor.u32 1.1754944e-38, %v838_v22  ;;  %vm837_vm4 = vcmp.eq.f32.partialorder %v836_v23, 8.507059e+37 }
0x10bd   : > { %320 = vrot.lane.b32.xlu1 %v1527_v29, %s1340_s20 }
0x10bf   : > { %v1164_v16 = vpop.eup %1163 }
0x10c0   : > { %v828_v19 = vmul.f32 %v1164_v16, %v826_v15  ;;  %vm833_vm1 = vweird.f32 %v1164_v16 }
0x10c1   : > { %vm834_vm3 = vmor %vm832_vm2, %vm833_vm1 }
0x10c2   : > { %v829_v29 = vsub.f32 1.0, %v828_v19 }
0x10c4   : > { %v830_v20 = vmul.f32 %v1164_v16, %v829_v29 }
0x10c5   : > { %474 = vrot.lane.b32.xlu1 %v1551_v17, %s1338_s26 }
0x10c6   : > { %v831_v21 = vadd.f32 %v1164_v16, %v830_v20 }
0x10c8   : > { %v835_v24 = vsel %vm834_vm3, %v1164_v16, %v831_v21 }
0x10c9   : > { %v840_v27 = vsel %vm837_vm4, %v839_v25, %v835_v24 }
0x10ca   : > { %v843_v30 = vmul.f32 %v840_v27, %v775_v2 }
0x10cd   : > { %552 = vrot.lane.b32.xlu1 %v1563_v45, %s1338_s26 }
0x10d5   : > { %633 = vrot.lane.b32.xlu1 %v1575_v9, %s1340_s20 }
0x10dd   : > { %786 = vrot.lane.b32.xlu1 %v781_v5, %s1338_s26 }
0x1127   : > { %v846_v26 = vpop.permute.xlu1 %845 }
0x1128   : > { %v848_v28 = vmul.f32 %v846_v26, %v840_v27 }
0x112a   : > { %850 = vrot.lane.b32.xlu2 %v848_v28, %s1339_s8 }
0x112f   : > { %v321_v35 = vpop.permute.xlu1 %320 }
0x1130   : > { %v325_v36 = vsel %vm324_vm6, %v323_v34, %v321_v35 }
0x1131   : > { %v328_v37 = vsel %vm326_vm7, %v325_v36, %v327_v33 }
0x1132   : > { %329 = vst.msk [vmem:[#allocation2] sm:$0xff] %vm248_vm0, %v328_v37  ;;  %396 = vrot.lane.b32.xlu2 %v1539_v55, %s1338_s26  ;;  %v400_v55 = vpop.permute.xlu0 %399 }
0x1137   : > { %v475_v48 = vpop.permute.xlu1 %474 }
0x1138   : > { %v480_v50 = vsel %vm251_vm5, %v1555_v18, %v475_v48 }
0x113a   : > { %477 = vrot.lane.b32.xlu2 %v1551_v17, %s1340_s20 }
0x113f   : > { %v553_v53 = vpop.permute.xlu1 %552 }
0x1140   : > { %v558_v57 = vsel %vm251_vm5, %v1567_v46, %v553_v53 }
0x1142   : > { %555 = vrot.lane.b32.xlu2 %v1563_v45, %s1340_s20  ;;  %v405_v45 = vld [vmem:[#allocation2] sm:$0xff] }
0x1147   : > { %v634_v61 = vpop.permute.xlu1 %633 }
0x114a   : > { %708 = vrot.lane.b32.xlu2 %v1587_v39, %s1338_s26 }
0x1152   : > { %789 = vrot.lane.b32.xlu2 %v781_v5, %s1340_s20 }
0x1184   : > { %v851_v38 = vpop.permute.xlu2 %850 }
0x1185   : > { %v853_v41 = vadd.f32 %v851_v38, %v843_v30 }
0x1187   : > { %1165 = vtanh.f32 %v853_v41 }
0x118c   : > { %v397_v42 = vpop.permute.xlu2 %396 }
0x118d   : > { %v1166_v43 = vpop.eup %1165  ;;  %v402_v17 = vsel %vm251_vm5, %v1543_v56, %v397_v42 }
0x118e   : > { %v403_v44 = vsel %vm324_vm6, %v402_v17, %v400_v55  ;;  %856 = vrot.lane.b32.xlu0 %v1166_v43, %s1338_s26 }
0x118f   : > { %v406_v47 = vsel %vm404_vm8, %v403_v44, %v405_v45 }
0x1190   : > { %407 = vst.msk [vmem:[#allocation2] sm:$0xff] %vm248_vm0, %v406_v47 }
0x1194   : > { %v478_v49 = vpop.permute.xlu2 %477 }
0x1195   : > { %v481_v56 = vsel %vm324_vm6, %v480_v50, %v478_v49 }
0x1196   : > { %630 = vrot.lane.b32.xlu0 %v1575_v9, %s1338_s26 }
0x1197   : > { %v483_v51 = vld [vmem:[#allocation2] sm:$0xff] }
0x1198   : > { %v484_v52 = vsel %vm482_vm9, %v481_v56, %v483_v51 }
0x1199   : > { %485 = vst.msk [vmem:[#allocation2] sm:$0xff] %vm248_vm0, %v484_v52 }
0x119c   : > { %v556_v54 = vpop.permute.xlu2 %555 }
0x119d   : > { %v559_v18 = vsel %vm324_vm6, %v558_v57, %v556_v54 }
0x119e   : > { %711 = vrot.lane.b32.xlu0 %v1587_v39, %s1340_s20 }
0x11a0   : > { %v561_v58 = vld [vmem:[#allocation2] sm:$0xff] }
0x11a1   : > { %v562_v9 = vsel %vm560_vm10, %v559_v18, %v561_v58 }
0x11a2   : > { %563 = vst.msk [vmem:[#allocation2] sm:$0xff] %vm248_vm0, %v562_v9 }
0x11a4   : > { %v709_v1 = vpop.permute.xlu2 %708 }
0x11a5   : > { %v714_v3 = vsel %vm251_vm5, %v1591_v40, %v709_v1 }
0x11a9   : > { %v639_v62 = vld [vmem:[#allocation2] sm:$0xff] }
0x11ac   : > { %v790_v8 = vpop.permute.xlu2 %789 }
0x1200   : > { %v857_v59 = vpop.permute.xlu0 %856 }
0x1201   : > { %v859_v60 = vmul.f32 %v857_v59, %v840_v27 }
0x1203   : > { %867 = vrot.lane.b32.xlu2 %v859_v60, %s1340_s20  ;;  %864 = vrot.lane.b32.xlu1 %v859_v60, %s1338_s26 }
0x1204   : > { %861 = vrot.lane.b32.xlu0 %v859_v60, %s1339_s8 }
0x1208   : > { %v631_v39 = vpop.permute.xlu0 %630 }
0x1209   : > { %v636_v46 = vsel %vm251_vm5, %v1579_v10, %v631_v39  ;;  %v787_v10 = vpop.permute.xlu1 %786 }
0x120a   : > { %v637_v63 = vsel %vm324_vm6, %v636_v46, %v634_v61  ;;  %v792_v11 = vsel %vm251_vm5, %v1604_v6, %v787_v10 }
0x120b   : > { %v640_v0 = vsel %vm638_vm11, %v637_v63, %v639_v62  ;;  %v793_v12 = vsel %vm324_vm6, %v792_v11, %v790_v8 }
0x120c   : > { %641 = vst.msk [vmem:[#allocation2] sm:$0xff] %vm248_vm0, %v640_v0 }
0x1210   : > { %v712_v2 = vpop.permute.xlu0 %711 }
0x1211   : > { %v715_v5 = vsel %vm324_vm6, %v714_v3, %v712_v2 }
0x1213   : > { %v717_v4 = vld [vmem:[#allocation2] sm:$0xff] }
0x1214   : > { %v718_v7 = vsel %vm716_vm12, %v715_v5, %v717_v4 }
0x1215   : > { %719 = vst.msk [vmem:[#allocation2] sm:$0xff] %vm248_vm0, %v718_v7 }
0x121c   : > { %v795_v13 = vld [vmem:[#allocation2] sm:$0xff] }
0x121d   : > { %v796_v14 = vsel %vm794_vm13, %v793_v12, %v795_v13 }
0x121e   : > { %797 = vst.msk [vmem:[#allocation2] sm:$0xff] %vm248_vm0, %v796_v14 }
0x1225   : > { %v873_v29 = vld [vmem:[#allocation2] sm:$0xff] }
0x125d   : > { %v868_v16 = vpop.permute.xlu2 %867 }
0x1275   : > { %v865_v40 = vpop.permute.xlu1 %864 }
0x1276   : > { %v862_v15 = vpop.permute.xlu0 %861 }
0x1277   : > { %v870_v19 = vsel %vm251_vm5, %v862_v15, %v865_v40 }
0x1278   : > { %v871_v20 = vsel %vm324_vm6, %v870_v19, %v868_v16 }
0x1279   : > { %v874_v6 = vsel %vm872_vm14, %v871_v20, %v873_v29 }
0x127a   : > { %875 = vst.msk [vmem:[#allocation2] sm:$0xff] %vm248_vm0, %v874_v6 }
0x1281   : > { %v876_v21 = vld [vmem:[#allocation2] sm:$0xff] }
0x1282   : > { %v877_v22 = vsel %vm248_vm0, %v876_v21, %v859_v60 }
0x1283   : > { %878 = vst [vmem:[%s242_s10] sm:$0xff] %v877_v22 }
0x1284   : > { %1284 = shalt.err (!%p1281_p5)
}
0x1285   : > { %1042 = dma.vmem_to_hbm [thread:$0]  (%p1454_p11), %s893_s17, 128, %s895_s24, %s880_s9  }
0x1286 PF: > { %s906_s21 = sand.u32 1, %s1319_s12   ;;  %p1727_p7 = scmp.ge.s32.totalorder %s1331_s15, 2 }
0x1287   : > { %s907_s6 = scalar_lea.sflag [#allocation5], %s906_s21 }
0x1288   : > { %p1056_p9 = pnand %p1727_p7, %p1458_p12 }
0x128a   : > { %p1057_p13 = pneg %p1056_p9 }
0x128c   : > { %1314 = dma.done.wait (%p1057_p13), %s907_s6, 128  }
0x128d   : > { %1316 = vsyncadd (%p1057_p13), %s907_s6, 4294967168  ;;  %p17_p0 = scmp.ge.s32.totalorder %s1382_s16, 4   ;;  %s1728_s12 = smov %s1323_s13 }
0x128e   : > { %s1729_s13 = smov %s1327_s14  ;;  %s1730_s14 = smov %s1391_s19 }
0x128f   : > { %s1731_s15 = smov %s1382_s16  ;;  %19 = sbr.rel (!%p17_p0) target bundleno = 8 (0x8), region = 99 }
0x1294   :  { %913 = vsyncpa [#allocation4], 1 }
0x1295   :  { %915 = vsyncpa [#allocation4 + $0x1], 1 }
0x1296   :  { %916 = vsyncpa [#allocation7], 1 }
0x1297   :  { %917 = vsyncpa [#allocation5], 1 }
0x1298   :  { %919 = vsyncpa [#allocation5 + $0x1], 1 }

</bundles_post_ra>
